<compile_context>
chip_gen: v5e
topology: v5e:2x2
jax: 0.10.0
libtpu: 0.0.40
codegen_flags: <defaults>
</compile_context>

<pallas_src>
import jax
import jax.numpy as jnp
from jax import lax
from jax.experimental import pallas as pl
from jax.experimental.pallas import tpu as pltpu


def _round_up(a, b):
    return (a + b - 1) // b * b


def _vmem_limit_bytes():
    """Generation-aware scoped-VMEM request with ~25% headroom (v7x has only 64 MiB)."""
    try:
        cap = int(pltpu.get_tpu_info().vmem_capacity_bytes)
    except Exception:
        cap = None
    if not cap:
        return 48 * 1024 * 1024                      # safe on every generation
    return int(min(100 * 1024 * 1024, max(32 * 1024 * 1024, cap * 3 // 4)))


def _make_scatter_kernel(flow, half, te):
    """Phase 1: accumulate per-node sums of messages into a resident (F, half) block.

    Grid is (2, n_edge_tiles): axis 0 ("parallel") picks which half of the node columns
    this core owns; axis 1 ("arbitrary") runs over edge tiles and accumulates.
    """
    t2s = flow == 'target_to_source'

    def kernel(m_ref, idxc_ref, agg_ref):
        c = pl.program_id(0)                                  # node-column half (megacore)
        t = pl.program_id(1)                                  # edge tile (reduction)

        @pl.when(t == 0)
        def _():
            agg_ref[...] = jnp.zeros_like(agg_ref)

        m = m_ref[...]                                        # (F, TE) f32
        idx = idxc_ref[...]                                   # (TE, 1) int32
        msg = jnp.tanh(m * 0.5) if t2s else m                 # EUP tanh (t2s only)

        # One-hot over this core's half of the node columns.  Not FLOP-bound: the cost is
        # the iota/compare/cast (VALU) and the one-hot stores, not the (F,TE)x(TE,half) dot.
        node_iota = lax.broadcasted_iota(jnp.int32, (te, half), 1) + c * half
        onehot = (node_iota == idx).astype(jnp.float32)       # OOR idx -> all-zero row

        agg_ref[...] += jnp.dot(msg, onehot, preferred_element_type=jnp.float32)

    return kernel


def _make_gather_kernel(flow, n_pad, te, F):
    """Phase 2: gather-minus-self + prior gather (+ tiny MLP on the VPU for t2s)."""
    t2s = flow == 'target_to_source'

    def kernel(*refs):
        if t2s:
            m_ref, idxr_ref, aggx_ref, mlp_ref, out_ref = refs
        else:
            m_ref, idxr_ref, aggx_ref, out_ref = refs

        m = m_ref[...]                                        # (F, TE)
        idx = idxr_ref[...]                                   # (1, TE)
        msg = jnp.tanh(m * 0.5) if t2s else m

        node_iota = lax.broadcasted_iota(jnp.int32, (n_pad, te), 0)
        onehot = (node_iota == idx).astype(jnp.float32)       # (N_pad, TE)

        # Fused gather of [agg ; x]: one (F+Fx, N_pad) x (N_pad, TE) MXU contraction.
        gathered = jnp.dot(aggx_ref[...], onehot,
                           preferred_element_type=jnp.float32)  # (F+Fx, TE)
        g_agg = gathered[0:F, :]                              # scatter_add(msg)[idx]
        xg = gathered[F:, :]                                  # extra[idx]
        out = g_agg - msg                                     # extrinsic message

        if not t2s:
            out_ref[...] = out + xg                           # update() is identity
        else:
            # torch: cat([out, xg], dim=1); col0 <- mlp(col0); return col0 * col1
            # col1 is column 1 of the concatenation: out[:,1] if F>=2, else xg[:,0].
            col0 = out[0:1, :]                                # (1, TE)
            col1 = out[1:2, :] if F >= 2 else xg[0:1, :]      # (1, TE)
            w1c = mlp_ref[:, 0:1]                             # (H, 1)
            b1c = mlp_ref[:, 1:2]
            w2c = mlp_ref[:, 2:3]
            b2c = mlp_ref[0:1, 3:4]                           # (1, 1)
            # 1->H->1 MLP as pure VPU broadcast-multiplies + one sublane reduction (XLU).
            h = jnp.maximum(col0 * w1c + b1c, 0.0)            # (H, TE)
            y = jnp.sum(h * w2c, axis=0, keepdims=True) + b2c  # (1, TE)
            out_ref[...] = y * col1

    return kernel


def graph_conv_forward(m, edge_index, x, mlp_params, flow, *, edge_tile=1024):
    """Pallas implementation of GraphConv.forward(m, edge_index, x)."""
    assert flow in ('source_to_target', 'target_to_source')
    if x.ndim == 1:
        x = x[:, None]                                        # mirrors x.unsqueeze(-1)
    m = m.astype(jnp.float32)
    x = x.astype(jnp.float32)

    E, F = m.shape
    N, Fx = x.shape
    j = 1 if flow == 'target_to_source' else 0
    idx = edge_index[j].astype(jnp.int32)                     # (E,)
    t2s = flow == 'target_to_source'

    vmem_limit = _vmem_limit_bytes()

    # ---- layout plumbing: lane-major, padded ----
    # Node axis padded to a multiple of 256 so phase 1 can split it into two lane-dense
    # 128-aligned halves (one per TensorCore on v7x).
    n_pad = _round_up(max(N, 1), 256)
    half = n_pad // 2

    # Edge tile: as large as possible while keeping the in-kernel (N_pad x TE) one-hot temp
    # within ~1/4 of the scoped-VMEM budget (the dominant per-tile allocation).
    onehot_budget = vmem_limit // 4
    te_cap = max(128, (onehot_budget // (n_pad * 4)) // 128 * 128)
    e_lane = _round_up(max(E, 1), 128)
    te = min(_round_up(edge_tile, 128), e_lane, te_cap)
    e_pad = _round_up(E, te)
    n_tiles = e_pad // te

    m_lane = jnp.zeros((F, e_pad), jnp.float32).at[:, :E].set(m.T)
    # Padded edges point at node index n_pad (out of range) -> all-zero one-hot column.
    idx_row = jnp.full((1, e_pad), n_pad, jnp.int32).at[0, :E].set(idx)
    idx_col = idx_row.reshape(e_pad, 1)
    x_lane = jnp.zeros((Fx, n_pad), jnp.float32).at[:, :N].set(x.T)

    cparams = dict(vmem_limit_bytes=vmem_limit)

    # ---- phase 1: scatter-add messages into per-node accumulator (megacore over halves) ----
    agg = pl.pallas_call(
        _make_scatter_kernel(flow, half, te),
        out_shape=jax.ShapeDtypeStruct((F, n_pad), jnp.float32),
        grid_spec=pltpu.PrefetchScalarGridSpec(
            num_scalar_prefetch=0,
            grid=(2, n_tiles),
            in_specs=[pl.BlockSpec((F, te), lambda c, t: (0, t)),
                      pl.BlockSpec((te, 1), lambda c, t: (t, 0))],
            out_specs=pl.BlockSpec((F, half), lambda c, t: (0, c)),
        ),
        compiler_params=pltpu.CompilerParams(
            dimension_semantics=("parallel", "arbitrary"), **cparams),
        # Not FLOP-bound (F is tiny): the true cost is one-hot build + stores; the numbers
        # below are just truthful HBM-bytes / executed-MXU-flops scheduling hints.
        cost_estimate=pl.CostEstimate(
            flops=2 * F * e_pad * n_pad,
            transcendentals=(F * e_pad) if t2s else 0,
            bytes_accessed=4 * (F * e_pad + e_pad + F * n_pad)),
    )(m_lane, idx_col)                                        # (F, N_pad)

    # Fuse the two gathers (per-node sums and the prior x) into one MXU contraction.
    aggx = jnp.concatenate([agg, x_lane], axis=0)             # (F+Fx, N_pad)

    out_cols = 1 if t2s else max(F, Fx)
    in_specs = [pl.BlockSpec((F, te), lambda t: (0, t)),
                pl.BlockSpec((1, te), lambda t: (0, t)),
                pl.BlockSpec((F + Fx, n_pad), lambda t: (0, 0))]
    args = [m_lane, idx_row, aggx]
    if t2s:
        w1, b1, w2, b2 = mlp_params                           # (1,H), (1,H), (H,1), (1,1)
        hidden = w1.shape[1]
        # Pack all MLP params into one small VMEM ref: columns = [w1, b1, w2, b2(bcast)].
        mlp_packed = jnp.stack(
            [w1.reshape(-1).astype(jnp.float32),
             b1.reshape(-1).astype(jnp.float32),
             w2.reshape(-1).astype(jnp.float32),
             jnp.broadcast_to(b2.reshape(()).astype(jnp.float32), (hidden,))],
            axis=1)                                           # (H, 4)
        in_specs.append(pl.BlockSpec((hidden, 4), lambda t: (0, 0)))
        args.append(mlp_packed)

    out_lane = pl.pallas_call(
        _make_gather_kernel(flow, n_pad, te, F),
        out_shape=jax.ShapeDtypeStruct((out_cols, e_pad), jnp.float32),
        grid_spec=pltpu.PrefetchScalarGridSpec(
            num_scalar_prefetch=0,
            grid=(n_tiles,),
            in_specs=in_specs,
            out_specs=pl.BlockSpec((out_cols, te), lambda t: (0, t)),
        ),
        compiler_params=pltpu.CompilerParams(
            dimension_semantics=("parallel",), **cparams),    # megacore-shard edge tiles
        cost_estimate=pl.CostEstimate(
            flops=2 * (F + Fx) * e_pad * n_pad,
            transcendentals=(F * e_pad) if t2s else 0,
            bytes_accessed=4 * (F * e_pad + e_pad + (F + Fx) * n_pad + out_cols * e_pad)),
    )(*args)                                                  # (out_cols, E_pad)

    # Back to edge-major (E, out_cols); drop padded edges.
    return out_lane[:, :E].T


def graph_conv_ref(m, edge_index, x, mlp_params, flow):
    """Pure-JAX reference matching the PyTorch semantics (float32)."""
    if x.ndim == 1:
        x = x[:, None]
    N = x.shape[0]
    j = 1 if flow == 'target_to_source' else 0
    idx = edge_index[j]
    w1, b1, w2, b2 = mlp_params

    msg = jnp.tanh(m / 2) if flow == 'target_to_source' else m
    agg = jax.ops.segment_sum(msg, idx, num_segments=N)
    out = agg[idx] - msg
    xg = x[idx]
    if flow == 'source_to_target':
        return out + xg
    # torch: cat([out, xg], dim=1); col0 <- mlp(col0); return col0 * col1
    cat = jnp.concatenate([out, xg], axis=1)
    col0 = cat[:, 0:1]
    col1 = cat[:, 1:2]
    col0 = jnp.maximum(col0 @ w1 + b1, 0.0) @ w2 + b2
    return col0 * col1


if __name__ == "__main__":
    key = jax.random.PRNGKey(0)
    k1, k2, k3, k4, k5, k6, k7 = jax.random.split(key, 7)

    # Small synthetic BP graph; edge_tile=128 so the grid has multiple edge tiles and the
    # accumulation / megacore-split code paths are all exercised.
    N = 48    # nodes
    E = 300   # edges

    x = jax.random.normal(k2, (N,), dtype=jnp.float32)        # 1-D prior -> unsqueezed inside
    edge_index = jax.random.randint(k3, (2, E), 0, N, dtype=jnp.int32)

    # Deterministic init for torch.nn.Sequential(Linear(1,10), ReLU, Linear(10,1))
    # (weights stored transposed so the math is x @ W^T + b).
    w1 = (jax.random.uniform(k4, (1, 10), dtype=jnp.float32) - 0.5) * 2.0
    b1 = (jax.random.uniform(k5, (1, 10), dtype=jnp.float32) - 0.5) * 2.0
    w2 = (jax.random.uniform(k6, (10, 1), dtype=jnp.float32) - 0.5) * 0.6
    b2 = (jax.random.uniform(k7, (1, 1), dtype=jnp.float32) - 0.5) * 0.6
    mlp_params = (w1, b1, w2, b2)

    ok = True
    for F in (1, 2):                                          # F=2 exercises the col1=out[:,1] path
        m = jax.random.normal(jax.random.fold_in(k1, F), (E, F), dtype=jnp.float32)
        for flow in ('source_to_target', 'target_to_source'):
            out = graph_conv_forward(m, edge_index, x, mlp_params, flow, edge_tile=128)
            out = jax.block_until_ready(out)
            ref = graph_conv_ref(m, edge_index, x, mlp_params, flow)
            if out.shape != ref.shape or not bool(jnp.allclose(out, ref, atol=1e-5, rtol=1e-5)):
                ok = False

    if ok:
        print("KERNEL_OK")
</pallas_src>

<mosaic_0001>
module attributes {stable_mosaic.version = 11 : i64} {
  func.func @kernel(%arg0: i32, %arg1: i32, %arg2: memref<1x128xf32, #tpu.memory_space<vmem>>, %arg3: memref<128x1xi32, #tpu.memory_space<vmem>>, %arg4: memref<1x128xf32, #tpu.memory_space<vmem>>) attributes {dimension_semantics = [#tpu.dimension_semantics<parallel>, #tpu.dimension_semantics<arbitrary>], iteration_bounds = array<i64: 2, 3>, scalar_prefetch = 0 : i64, scratch_operands = 0 : i64, tpu.core_type = #tpu.core_type<tc>, window_params = [{transform_indices = @transform_0, window_bounds = array<i64: 1, 128>}, {transform_indices = @transform_1, window_bounds = array<i64: 128, 1>}, {transform_indices = @transform_2, window_bounds = array<i64: 1, 128>}]} {
    %c0_i32 = arith.constant 0 : i32
    %0 = arith.cmpi eq, %arg1, %c0_i32 : i32
    %1 = arith.extui %0 : i1 to i32
    %c0_i32_0 = arith.constant 0 : i32
    %2 = arith.cmpi ne, %1, %c0_i32_0 : i32
    scf.if %2 {
      %cst_8 = arith.constant 0.000000e+00 : f32
      %17 = vector.broadcast %cst_8 : f32 to vector<1x128xf32>
      %c0_9 = arith.constant 0 : index
      %c0_10 = arith.constant 0 : index
      %18 = vector.load %arg4[%c0_9, %c0_10] : memref<1x128xf32, #tpu.memory_space<vmem>>, vector<1x128xf32>
      tpu.vector_store %arg4[%c0_9, %c0_10], %17 {strides = array<i32>} : memref<1x128xf32, #tpu.memory_space<vmem>>, vector<1x128xf32>,
    } else {
    }
    %c0 = arith.constant 0 : index
    %c0_1 = arith.constant 0 : index
    %3 = vector.load %arg2[%c0, %c0_1] : memref<1x128xf32, #tpu.memory_space<vmem>>, vector<1x128xf32>
    %c0_2 = arith.constant 0 : index
    %c0_3 = arith.constant 0 : index
    %4 = vector.load %arg3[%c0_2, %c0_3] : memref<128x1xi32, #tpu.memory_space<vmem>>, vector<128x1xi32>
    %5 = tpu.iota {dimensions = array<i32: 1>} : vector<128x128xi32>
    %c128_i32 = arith.constant 128 : i32
    %6 = arith.muli %arg0, %c128_i32 : i32
    %7 = vector.broadcast %6 : i32 to vector<128x128xi32>
    %8 = arith.addi %5, %7 : vector<128x128xi32>
    %9 = vector.broadcast %4 : vector<128x1xi32> to vector<128x128xi32>
    %10 = arith.cmpi eq, %8, %9 : vector<128x128xi32>
    %11 = arith.extui %10 : vector<128x128xi1> to vector<128x128xi32>
    %12 = arith.sitofp %11 : vector<128x128xi32> to vector<128x128xf32>
    %c0_4 = arith.constant 0 : index
    %c0_5 = arith.constant 0 : index
    %13 = vector.load %arg4[%c0_4, %c0_5] : memref<1x128xf32, #tpu.memory_space<vmem>>, vector<1x128xf32>
    %cst = arith.constant dense<0.000000e+00> : vector<1x128xf32>
    %14 = tpu.matmul %3, %12, %cst {dimension_numbers = #tpu.dot_dimension_numbers<[1], [0], [0], [1], [0, 0, 1, 1], [], []>} : vector<1x128xf32>, vector<128x128xf32>, vector<1x128xf32> -> vector<1x128xf32>
    %15 = arith.addf %13, %14 : vector<1x128xf32>
    %c0_6 = arith.constant 0 : index
    %c0_7 = arith.constant 0 : index
    %16 = vector.load %arg4[%c0_6, %c0_7] : memref<1x128xf32, #tpu.memory_space<vmem>>, vector<1x128xf32>
    tpu.vector_store %arg4[%c0_6, %c0_7], %15 {strides = array<i32>} : memref<1x128xf32, #tpu.memory_space<vmem>>, vector<1x128xf32>,
    return
  }
  func.func @transform_0(%arg0: i32, %arg1: i32) -> (i32, i32) {
    %c0_i32 = arith.constant 0 : i32
    %c0_i32_0 = arith.constant 0 : i32
    return %c0_i32, %arg1 : i32, i32
  }
  func.func @transform_1(%arg0: i32, %arg1: i32) -> (i32, i32) {
    %c0_i32 = arith.constant 0 : i32
    %c0_i32_0 = arith.constant 0 : i32
    return %arg1, %c0_i32 : i32, i32
  }
  func.func @transform_2(%arg0: i32, %arg1: i32) -> (i32, i32) {
    %c0_i32 = arith.constant 0 : i32
    %c0_i32_0 = arith.constant 0 : i32
    return %c0_i32, %arg0 : i32, i32
  }
}

</mosaic_0001>

<bundles_post_ra>
// kernel: tpu_custom_call.1
= control target key start
LH: loop header
LB: loop body
LE: loop exit
PB: predicated region body
PF: predicated region fallthrough
CT: control target
= control target key end

     0   :  { %7 = vsyncpa [#allocation3], 0  ;;  %s796_s0 = inlined_call_operand.vmem [shape: f32[1,384], index: 0, kind: input, shape index: {}]   ;;  %s797_s1 = inlined_call_operand.vmem [shape: s32[384,1], index: 1, kind: input, shape index: {}]   ;;  %s798_s2 = inlined_call_operand.hbm [shape: f32[1,256], index: 2, kind: output, shape index: {}]  }
   0x1   :  { %9 = vsyncpa [#allocation3 + $0x1], 0  ;;  %s637_s9 = smov 0   ;;  %s639_s10 = smov 0  }
   0x2   :  { %s641_s11 = smov 0   ;;  %s643_s12 = smov 0  }
   0x3   :  { %s645_s13 = smov 0   ;;  %s647_s14 = smov 0  }
   0x4   :  { %s649_s15 = smov 0   ;;  %s651_s16 = smov 0  }
   0x5 LB: > { %s403_s17 = sadd.s32 4294967295, %s617_s16   ;;  %s404_s18 = sadd.s32 4294967294, %s617_s16   ;;  %s617_s16 = sphi %s651_s16, %s15_s16   ;;  %s613_s15 = sphi %s649_s15, %s807_s15   ;;  %s609_s14 = sphi %s647_s14, %s806_s14   ;;  %s605_s13 = sphi %s645_s13, %s805_s13   ;;  %s601_s12 = sphi %s643_s12, %s804_s12   ;;  %s597_s11 = sphi %s641_s11, %s803_s11   ;;  %s593_s10 = sphi %s639_s10, %s802_s10   ;;  %s589_s9 = sphi %s637_s9, %s801_s9  }
   0x6   : > { %s24_s19 = sadd.s32 1, %s609_s14  ;;  %s27_s20 = sadd.s32 1, %s613_s15 }
   0x7   : > { %p25_p0 = scmp.ge.s32.totalorder %s24_s19, 3  ;;  %p96_p1 = scmp.ne.s32.totalorder %s597_s11, %s593_s10 }
   0x8   : > { %p97_p2 = scmp.eq.s32.totalorder %s403_s17, 5  ;;  %p102_p4 = scmp.ne.s32.totalorder %s593_s10, %s589_s9 }
   0x9   : > { %s809_s19 = smov (%p25_p0, %s24_s19), 0  ;;  %s811_s20 = smov (!%p25_p0, %s27_s20), %s613_s15 }
   0xa   : > { %p686_p3 = por %p97_p2, %p96_p1  ;;  %p29_p5 = scmp.ge.s32.totalorder %s811_s20, 2 }
   0xb   : > { %p103_p6 = scmp.eq.s32.totalorder %s404_s18, 5  ;;  %p407_p7 = scmp.ge.s32.totalorder %s617_s16, 1 }
   0xc   : > { %p136_p8 = scmp.lt.s32.totalorder %s617_s16, 7  ;;  %s813_s20 = smov (%p29_p5, %s811_s20), 0 }
   0xd   : > { %p696_p9 = por %p103_p6, %p102_p4  ;;  %s83_s23 = ssub.s32 %s613_s15, %s813_s20 }
   0xe   : > { %p137_p10 = pnand %p407_p7, %p136_p8  ;;  %s86_s24 = sadd.s32 1, %s597_s11 }
   0xf   : > { %p84_p11 = scmp.eq.s32.totalorder %s83_s23, 0  ;;  %s158_s26 = sand.u32 (!%p137_p10), 1, %s593_s10  }
  0x10   : > { %140 = sbr.rel (%p137_p10) target bundleno = 320 (0x140), region = 28  ;;  %p160_p12 = scmp.lt.s32.totalorder (!%p137_p10), %s601_s12, 2 }
  0x11   : > { %s704_s25 = scalar_select %p84_p11, %s597_s11, %s86_s24  }
  0x12   : > { %s408_s27 = sshll.u32 (!%p137_p10), %s601_s12, 4  ;;  %s723_s8 = scalar_lea.vmem (!%p137_p10), [#allocation2], %s158_s26 }
  0x13   : > { %p164_p13 = scmp.lt.s32.totalorder (!%p137_p10), %s408_s27, 47  ;;  %p410_p0 = scmp.ne.s32.totalorder (!%p137_p10), %s601_s12, 0 }
  0x15   : > { %s710_s28 = scalar_select %p160_p12, %s601_s12, 2 }
  0x16   : > { %s815_s27 = smov (!%p164_p13, %s408_s27), 47  ;;  %172 = sbr.rel (%p410_p0) target bundleno = 29 (0x1d), region = 32 }
  0x17   : > { %s162_s3 = scalar_lea.vmem %s796_s0, %s710_s28  ;;  %s409_s4 = sshll.u32 %s815_s27, 3 }
  0x18   : > { %s719_s7 = scalar_lea.vmem %s797_s1, %s409_s4 }
  0x1b   : > { %v619_v0 = vmov 0.0  }
  0x1c   : > { %173 = vst [vmem:[%s723_s8] sm:$0x1] %v619_v0 }
  0x1d PF: > { %v190_v1 = vld [vmem:[%s719_s7 + $0x78] sm:$0xff]  ;;  %v188_v2 = vld [vmem:[%s719_s7 + $0x68] sm:$0xff]  ;;  %v620_v4 = vmov 0   ;;  %v187_v5 = vld [vmem:[%s719_s7 + $0x60] sm:$0xff]  ;;  %v191_v18 = vlaneseq  ;;  %s411_s12 = sshll.u32 %s605_s13, 7  ;;  %v621_v25 = vmov 1.0   ;;  %s324_s27 = scalar_lea.hbm %s798_s2, %s605_s13 }
  0x1e   : > { %v186_v3 = vld [vmem:[%s719_s7 + $0x58] sm:$0xff]  ;;  %522 = vset.pattern.permute.xlu2 %v620_v4  ;;  %521 = vset.pattern.permute.xlu1 %v620_v4  ;;  %v189_v6 = vld [vmem:[%s719_s7 + $0x70] sm:$0xff]  ;;  %v183_v8 = vld [vmem:[%s719_s7 + $0x40] sm:$0xff]  ;;  %v194_v20 = vstv %s411_s12  ;;  %s326_s29 = sshll.u32 %s723_s8, 4  ;;  %s328_s30 = sshll.u32 %s324_s27, 4  ;;  %s327_s29 = int_to_ptr.vmem [resolvable:$true] %s326_s29  ;;  %s329_s30 = int_to_ptr.hbm [resolvable:$true] %s328_s30 }
  0x1f   : > { %520 = vset.pattern.permute.xlu0 %v620_v4  ;;  %236 = vperm.xlu1 %521, %v188_v2   ;;  %v185_v7 = vld [vmem:[%s719_s7 + $0x50] sm:$0xff]  ;;  %v184_v9 = vld [vmem:[%s719_s7 + $0x48] sm:$0xff]  ;;  %v182_v10 = vld [vmem:[%s719_s7 + $0x38] sm:$0xff]  ;;  %v192_v19 = vand.u32 127, %v191_v18  ;;  %s316_s4 = scalar_lea.sflag [#allocation3], %s158_s26  ;;  %s537_s28 = sshra.s32 %s329_s30, 4  ;;  %s538_s28 = int_to_ptr.hbm [resolvable:$true] %s537_s28 }
  0x20   : > { %242 = vperm.xlu0 %520, %v190_v1   ;;  %230 = vperm.xlu2 %522, %v186_v3   ;;  %v180_v11 = vld [vmem:[%s719_s7 + $0x28] sm:$0xff]  ;;  %v181_v12 = vld [vmem:[%s719_s7 + $0x30] sm:$0xff]  ;;  %v179_v13 = vld [vmem:[%s719_s7 + $0x20] sm:$0xff]  ;;  %s543_s13 = scalar_lea.hbm %s798_s2, 2  ;;  %p544_p5 = scmp.lt.s32.totalorder %s538_s28, %s798_s2 }
  0x21   : > { %v177_v14 = vld [vmem:[%s719_s7 + $0x10] sm:$0xff]  ;;  %v178_v15 = vld [vmem:[%s719_s7 + $0x18] sm:$0xff]  ;;  %v176_v16 = vld [vmem:[%s719_s7 + $0x8] sm:$0xff]  ;;  %v195_v22 = vadd.s32 %v194_v20, %v192_v19 }
  0x22   : > { %v175_v17 = vld [vmem:[%s719_s7] sm:$0xff] }
  0x23   : > { %v174_v39 = vld [vmem:[%s162_s3] sm:$0x1]  ;;  %s539_s3 = scalar_lea.hbm %s538_s28, 1 }
  0x24   : > { %v292_v40 = vld [vmem:[%s723_s8] sm:$0x1]  ;;  %p540_p1 = scmp.ne.s32.totalorder %s538_s28, %s539_s3  ;;  %p545_p6 = scmp.lt.s32.totalorder %s543_s13, %s539_s3 }
  0x26   : > { %p541_p2 = pnand %p540_p1, %p686_p3  ;;  %p546_p7 = por %p545_p6, %p544_p5 }
  0x27   : > { %233 = vperm.xlu1 %521, %v187_v5  }
  0x28   : > { %239 = vperm.xlu0 %520, %v189_v6   ;;  %227 = vperm.xlu2 %522, %v185_v7   ;;  %p542_p4 = pneg %p541_p2 }
  0x2a   : > { %p547_p8 = pnand %p546_p7, %p542_p4 }
  0x2f   : > { %221 = vperm.xlu1 %521, %v183_v8  }
  0x30   : > { %224 = vperm.xlu0 %520, %v184_v9   ;;  %218 = vperm.xlu2 %522, %v182_v10  }
  0x37   : > { %212 = vperm.xlu1 %521, %v180_v11  }
  0x38   : > { %215 = vperm.xlu0 %520, %v181_v12   ;;  %209 = vperm.xlu2 %522, %v179_v13  }
  0x3f   : > { %203 = vperm.xlu1 %521, %v177_v14  }
  0x40   : > { %206 = vperm.xlu0 %520, %v178_v15   ;;  %200 = vperm.xlu2 %522, %v176_v16  }
  0x48   : > { %197 = vperm.xlu0 %520, %v175_v17  }
  0x7a   : > { %v231_v21 = vpop.permute.xlu2 %230 }
  0x7b   : > { %vm255_vm4 = vcmp.eq.s32.totalorder %v195_v22, %v231_v21 }
  0x82   : > { %v228_v26 = vpop.permute.xlu2 %227 }
  0x83   : > { %vm254_vm5 = vcmp.eq.s32.totalorder %v195_v22, %v228_v26 }
  0x8a   : > { %v219_v29 = vpop.permute.xlu2 %218 }
  0x8b   : > { %vm251_vm8 = vcmp.eq.s32.totalorder %v195_v22, %v219_v29 }
  0x91   : > { %v237_v23 = vpop.permute.xlu1 %236 }
  0x92   : > { %v243_v24 = vpop.permute.xlu0 %242  ;;  %vm257_vm2 = vcmp.eq.s32.totalorder %v195_v22, %v237_v23  ;;  %v210_v33 = vpop.permute.xlu2 %209 }
  0x93   : > { %vm259_vm0 = vcmp.eq.s32.totalorder %v195_v22, %v243_v24  ;;  %vm248_vm11 = vcmp.eq.s32.totalorder %v195_v22, %v210_v33 }
  0x94   : > { %428 = vmatpush.msk.msra.mxu0 %vm259_vm0, %v621_v25 }
  0x99   : > { %v234_v27 = vpop.permute.xlu1 %233 }
  0x9a   : > { %v240_v28 = vpop.permute.xlu0 %239  ;;  %vm256_vm3 = vcmp.eq.s32.totalorder %v195_v22, %v234_v27  ;;  %v201_v37 = vpop.permute.xlu2 %200 }
  0x9b   : > { %vm258_vm1 = vcmp.eq.s32.totalorder %v195_v22, %v240_v28  ;;  %vm245_vm14 = vcmp.eq.s32.totalorder %v195_v22, %v201_v37 }
  0x9c   : > { %429 = vmatpush.msk.msra.mxu0 %vm258_vm1, %v621_v25 }
  0x9e   : > { %430 = vmatpush.msk.msra.mxu0 %vm257_vm2, %v621_v25 }
  0xa0   : > { %431 = vmatpush.msk.msra.mxu0 %vm256_vm3, %v621_v25 }
  0xa1   : > { %v222_v30 = vpop.permute.xlu1 %221 }
  0xa2   : > { %432 = vmatpush.msk.msra.mxu0 %vm255_vm4, %v621_v25  ;;  %v225_v31 = vpop.permute.xlu0 %224  ;;  %vm252_vm7 = vcmp.eq.s32.totalorder %v195_v22, %v222_v30 }
  0xa3   : > { %vm253_vm6 = vcmp.eq.s32.totalorder %v195_v22, %v225_v31 }
  0xa4   : > { %433 = vmatpush.msk.msra.mxu0 %vm254_vm5, %v621_v25 }
  0xa6   : > { %434 = vmatpush.msk.msra.mxu0 %vm253_vm6, %v621_v25 }
  0xa8   : > { %435 = vmatpush.msk.msra.mxu0 %vm252_vm7, %v621_v25 }
  0xa9   : > { %v213_v32 = vpop.permute.xlu1 %212 }
  0xaa   : > { %436 = vmatpush.msk.msra.mxu0 %vm251_vm8, %v621_v25  ;;  %v216_v34 = vpop.permute.xlu0 %215  ;;  %vm249_vm10 = vcmp.eq.s32.totalorder %v195_v22, %v213_v32 }
  0xab   : > { %vm250_vm9 = vcmp.eq.s32.totalorder %v195_v22, %v216_v34 }
  0xac   : > { %437 = vmatpush.msk.msra.mxu0 %vm250_vm9, %v621_v25 }
  0xae   : > { %438 = vmatpush.msk.msra.mxu0 %vm249_vm10, %v621_v25 }
  0xb0   : > { %439 = vmatpush.msk.msra.mxu0 %vm248_vm11, %v621_v25 }
  0xb1   : > { %v204_v36 = vpop.permute.xlu1 %203 }
  0xb2   : > { %v207_v35 = vpop.permute.xlu0 %206  ;;  %vm246_vm13 = vcmp.eq.s32.totalorder %v195_v22, %v204_v36 }
  0xb3   : > { %vm247_vm12 = vcmp.eq.s32.totalorder %v195_v22, %v207_v35 }
  0xb4   : > { %440 = vmatpush.msk.msra.mxu0 %vm247_vm12, %v621_v25 }
  0xb6   : > { %441 = vmatpush.msk.msra.mxu0 %vm246_vm13, %v621_v25 }
  0xb8   : > { %442 = vmatpush.msk.msra.mxu0 %vm245_vm14, %v621_v25 }
  0xba   : > { %v198_v38 = vpop.permute.xlu0 %197 }
  0xbb   : > { %vm244_vm15 = vcmp.eq.s32.totalorder %v195_v22, %v198_v38 }
  0xbc   : > { %443 = vmatpush.msk.msra.mxu0 %vm244_vm15, %v621_v25 }
  0xbd   : > { %309 = vmatmul.f32.vlgmr.msra.gmra.mxu0 %v174_v39 }
 0x13a   : > { %v310_v41 = vpop.f32.mrf.mxu0 }
 0x13b   : > { %v313_v42 = vadd.f32 %v310_v41, %v292_v40 }
 0x13d   : > { %314 = vst [vmem:[%s723_s8] sm:$0x1] %v313_v42 }
 0x13e   : > { %550 = shalt.err (!%p547_p8)
}
 0x13f   : > { %446 = dma.vmem_to_hbm [thread:$0]  (%p686_p3), %s327_s29, 16, %s329_s30, %s316_s4  }
 0x140 PF: > { %p452_p10 = scmp.ge.s32.totalorder %s617_s16, 2  ;;  %s340_s26 = sand.u32 1, %s589_s9  }
 0x141   : > { %s341_s8 = scalar_lea.sflag [#allocation3], %s340_s26 }
 0x142   : > { %p449_p11 = pnand %p452_p10, %p696_p9 }
 0x144   : > { %p450_p12 = pneg %p449_p11 }
 0x146   : > { %584 = dma.done.wait (%p450_p12), %s341_s8, 16  }
 0x147   : > { %586 = vsyncadd (%p450_p12), %s341_s8, 4294967280  ;;  %s15_s16 = sadd.s32 1, %s617_s16   ;;  %s801_s9 = smov %s593_s10 }
 0x148   : > { %p12_p13 = scmp.ge.s32.totalorder %s15_s16, 8   ;;  %s802_s10 = smov %s597_s11 }
 0x149   : > { %s803_s11 = smov %s704_s25  ;;  %s804_s12 = smov %s609_s14 }
 0x14a   : > { %s805_s13 = smov %s613_s15  ;;  %s806_s14 = smov %s809_s19 }
 0x14b   : > { %s807_s15 = smov %s813_s20  ;;  %14 = sbr.rel (!%p12_p13) target bundleno = 5 (0x5), region = 70 }
 0x150   :  { %346 = vsyncpa [#allocation3], 1 }
 0x151   :  { %348 = vsyncpa [#allocation3 + $0x1], 1 }

</bundles_post_ra>
